<compile_context>
chip_gen: v5e
topology: v5e:2x2
jax: 0.10.0
libtpu: 0.0.40
codegen_flags: <defaults>
</compile_context>

<pallas_src>
import functools

import jax
import jax.numpy as jnp
from jax.experimental import pallas as pl
from jax.experimental.pallas import tpu as pltpu


# ------------------------------ Pallas kernel -------------------------------


def _momentum_kernel(s_ref, proto_ref, mem_ref, out_ref):
    """out = (1 - k) * proto + k * memory   (elementwise, VPU).

    s_ref: scalar-prefetched float32 SMEM vector [k, 1 - k].
    """
    k = s_ref[0]
    one_minus_k = s_ref[1]
    blend = (one_minus_k * proto_ref[...].astype(jnp.float32)
             + k * mem_ref[...].astype(jnp.float32))
    out_ref[...] = blend.astype(out_ref.dtype)


# ------------------------------ tiling helper --------------------------------

# ~2 MiB per array tile; 3 arrays x 2 buffers ~= 12 MiB live VMEM (under the
# v5e 16 MiB scoped default, comfortable on v6e / v7x).
_TARGET_TILE_BYTES = 2 * 1024 * 1024


def _node_tile(n, f, itemsize):
    # Feature dim is the lane axis: keep the full row per block so DMAs are
    # contiguous and stores stay lane-dense when f % 128 == 0.
    if n % 8 != 0:
        # Full-extent block on the sublane axis is always legal.
        # TODO(synk): pad node_num to a multiple of 8 for huge, oddly shaped
        # buffers so a bounded tile can be used instead of one giant block.
        return n
    tn = max(8, min(n, (_TARGET_TILE_BYTES // (f * itemsize)) // 8 * 8))
    while n % tn != 0:  # largest multiple-of-8 divisor of n <= target
        tn -= 8
    # Ensure >= 2 blocks along the 'parallel' node axis so both TensorCores
    # on a v7x chip get work.
    if tn == n and n % 16 == 0:
        tn = n // 2
    return tn


# ------------------------------ pallas_call wrapper ---------------------------


@functools.partial(jax.jit, donate_argnums=(1,))
def momentum_update_pallas(proto, memory, keep_coefficient):
    """memory <- (1 - k) * proto + k * memory, updated in place (aliased)."""
    n, f = memory.shape
    tn = _node_tile(n, f, jnp.dtype(memory.dtype).itemsize)
    grid = (n // tn,)

    k = jnp.asarray(keep_coefficient, dtype=jnp.float32)
    scalars = jnp.stack([k, 1.0 - k])  # float32 SMEM scalars: [k, 1-k]

    spec = pl.BlockSpec((tn, f), lambda i, s: (i, 0))
    return pl.pallas_call(
        _momentum_kernel,
        out_shape=jax.ShapeDtypeStruct((n, f), memory.dtype),
        grid_spec=pltpu.PrefetchScalarGridSpec(
            num_scalar_prefetch=1,
            grid=grid,
            in_specs=[spec, spec],
            out_specs=spec,
        ),
        # Call operands are (scalars, proto, memory): alias memory -> output 0
        # so the state buffer is updated in place (pairs with donate_argnums).
        input_output_aliases={2: 0},
        compiler_params=pltpu.CompilerParams(
            dimension_semantics=("parallel",)
        ),
    )(scalars, proto, memory)


# ------------------------------ Module wrapper --------------------------------


class MemoryMomentum:
    """JAX/Pallas port of the PyTorch MemoryMomentum module (stateful buffer)."""

    def __init__(self, node_num, feature_dim, key):
        # torch.rand -> uniform [0, 1), float32
        self.memory = jax.random.uniform(
            key, (node_num, feature_dim), dtype=jnp.float32
        )

    def __call__(
        self,
        inputs,
        keep_coefficient=1.0,
        synchronize_memory=False,
        warming_up=True,
        momentum_flag=False,
    ):
        if synchronize_memory:
            # memory <- inputs.  JAX arrays are immutable; rebinding the
            # reference IS the copy -- no kernel, no extra HBM round trip.
            self.memory = inputs
        elif warming_up:
            pass
        elif momentum_flag:
            self.memory = momentum_update_pallas(
                inputs, self.memory, float(keep_coefficient)
            )
        # `memory * 1.0` in the PyTorch reference is an identity on an
        # immutable array: return the buffer directly (no identity kernel).
        return self.memory


# ------------------------------ main ------------------------------------------


if __name__ == "__main__":
    node_num, feature_dim = 16, 256  # small, (8,128)-aligned

    key = jax.random.PRNGKey(0)
    k_mem, k_in = jax.random.split(key)

    module = MemoryMomentum(node_num, feature_dim, k_mem)
    init_memory = module.memory

    inputs = jax.random.normal(k_in, (node_num, feature_dim), dtype=jnp.float32)

    # 1) warming_up=True (default): memory unchanged.
    out_warm = module(inputs)
    jax.block_until_ready(out_warm)
    assert bool(jnp.allclose(out_warm, init_memory))

    # Reference for the momentum path, computed BEFORE the update because the
    # old memory buffer is donated (in-place alias) to the kernel call.
    k_coef = 0.9
    ref_mom = jax.block_until_ready(
        (1.0 - k_coef) * inputs + k_coef * init_memory
    )

    # 2) momentum path (the Pallas kernel): memory <- (1-k)*inputs + k*memory
    out_mom = module(
        inputs,
        keep_coefficient=k_coef,
        warming_up=False,
        momentum_flag=True,
    )
    jax.block_until_ready(out_mom)
    assert bool(jnp.allclose(out_mom, ref_mom, rtol=1e-6, atol=1e-6))

    # 3) synchronize_memory path: memory <- inputs (pure rebind, no kernel).
    out_sync = module(inputs, synchronize_memory=True)
    jax.block_until_ready(out_sync)
    assert bool(jnp.allclose(out_sync, inputs))

    print("KERNEL_OK")
</pallas_src>

<mosaic_0001>
module attributes {stable_mosaic.version = 11 : i64} {
  func.func @_momentum_kernel(%arg0: i32, %arg1: memref<2xf32, #tpu.memory_space<smem>>, %arg2: memref<8x256xf32, #tpu.memory_space<vmem>>, %arg3: memref<8x256xf32, #tpu.memory_space<vmem>>, %arg4: memref<8x256xf32, #tpu.memory_space<vmem>>) attributes {dimension_semantics = [#tpu.dimension_semantics<parallel>], iteration_bounds = array<i64: 2>, scalar_prefetch = 1 : i64, scratch_operands = 0 : i64, tpu.core_type = #tpu.core_type<tc>, window_params = [{transform_indices = @transform_0, window_bounds = array<i64: 8, 256>}, {transform_indices = @transform_1, window_bounds = array<i64: 8, 256>}, {transform_indices = @transform_2, window_bounds = array<i64: 8, 256>}]} {
    %c0 = arith.constant 0 : index
    %0 = memref.load %arg1[%c0] : memref<2xf32, #tpu.memory_space<smem>>
    %c1 = arith.constant 1 : index
    %1 = memref.load %arg1[%c1] : memref<2xf32, #tpu.memory_space<smem>>
    %c0_0 = arith.constant 0 : index
    %c0_1 = arith.constant 0 : index
    %2 = vector.load %arg2[%c0_0, %c0_1] : memref<8x256xf32, #tpu.memory_space<vmem>>, vector<8x256xf32>
    %3 = vector.broadcast %1 : f32 to vector<8x256xf32>
    %4 = arith.mulf %3, %2 : vector<8x256xf32>
    %c0_2 = arith.constant 0 : index
    %c0_3 = arith.constant 0 : index
    %5 = vector.load %arg3[%c0_2, %c0_3] : memref<8x256xf32, #tpu.memory_space<vmem>>, vector<8x256xf32>
    %6 = vector.broadcast %0 : f32 to vector<8x256xf32>
    %7 = arith.mulf %6, %5 : vector<8x256xf32>
    %8 = arith.addf %4, %7 : vector<8x256xf32>
    %c0_4 = arith.constant 0 : index
    %c0_5 = arith.constant 0 : index
    %9 = vector.load %arg4[%c0_4, %c0_5] : memref<8x256xf32, #tpu.memory_space<vmem>>, vector<8x256xf32>
    tpu.vector_store %arg4[%c0_4, %c0_5], %8 {strides = array<i32>} : memref<8x256xf32, #tpu.memory_space<vmem>>, vector<8x256xf32>,
    return
  }
  func.func @transform_0(%arg0: i32, %arg1: memref<2xf32, #tpu.memory_space<smem>>) -> (i32, i32) {
    %c0_i32 = arith.constant 0 : i32
    %c0_i32_0 = arith.constant 0 : i32
    return %arg0, %c0_i32 : i32, i32
  }
  func.func @transform_1(%arg0: i32, %arg1: memref<2xf32, #tpu.memory_space<smem>>) -> (i32, i32) {
    %c0_i32 = arith.constant 0 : i32
    %c0_i32_0 = arith.constant 0 : i32
    return %arg0, %c0_i32 : i32, i32
  }
  func.func @transform_2(%arg0: i32, %arg1: memref<2xf32, #tpu.memory_space<smem>>) -> (i32, i32) {
    %c0_i32 = arith.constant 0 : i32
    %c0_i32_0 = arith.constant 0 : i32
    return %arg0, %c0_i32 : i32, i32
  }
}

</mosaic_0001>

<bundles_post_ra>
// kernel: momentum_update_pallas.1
= control target key start
LH: loop header
LB: loop body
LE: loop exit
PB: predicated region body
PF: predicated region fallthrough
CT: control target
= control target key end

     0   :  { %s557_s15 = smov [#allocation3]   ;;  %s741_s0 = inlined_call_operand.vmem [shape: f32[2], index: 0, kind: input, shape index: {}]   ;;  %s742_s1 = inlined_call_operand.hbm [shape: f32[16,256], index: 1, kind: input, shape index: {}]   ;;  %s743_s2 = inlined_call_operand.hbm [shape: f32[16,256], index: 2, kind: input, shape index: {}, may-alias: {2,3}]   ;;  %s744_s3 = inlined_call_operand.hbm [shape: f32[16,256], index: 3, kind: output, shape index: {}, may-alias: {2,3}]  }
   0x1   :  { %s9_s14 = sshll.u32 %s741_s0, 4  ;;  %s10_s14 = int_to_ptr.vmem [resolvable:$true] %s9_s14 }
   0x2   :  { %12 = dma.vmem_to_smem %s10_s14, 16, %s557_s15, [#allocation2] }
   0x3   :  { %527 = dma.done.wait [#allocation2], 16 }
   0x4   :  { %528 = vsyncadd [#allocation2], 4294967280 }
   0x5   :  { %15 = sfence }
   0x6   :  { %16 = vsyncpa [#allocation5], 0 }
   0x7   :  { %18 = vsyncpa [#allocation5 + $0x1], 0 }
   0x8   :  { %19 = vsyncpa [#allocation8], 0 }
   0x9   :  { %21 = vsyncpa [#allocation8 + $0x1], 0 }
   0xa   :  { %22 = vsyncpa [#allocation6], 0 }
   0xb   :  { %24 = vsyncpa [#allocation6 + $0x1], 0  ;;  %s581_s16 = smov 0   ;;  %s583_s17 = smov 0  }
   0xc   :  { %s585_s18 = smov 0   ;;  %s587_s19 = smov 0  }
   0xd LB: > { %s602_s0 = sadd.s32 4294967295, %s555_s19   ;;  %s337_s20 = sadd.s32 4294967294, %s555_s19   ;;  %s555_s19 = sphi %s587_s19, %s755_s19   ;;  %s551_s18 = sphi %s585_s18, %s754_s18   ;;  %s547_s17 = sphi %s583_s17, %s753_s17   ;;  %s543_s16 = sphi %s581_s16, %s752_s16  }
   0xe   : > { %s606_s21 = sadd.s32 1, %s555_s19   ;;  %s37_s22 = sadd.s32 1, %s551_s18 }
   0xf   : > { %s34_s23 = ssub.s32 %s555_s19, %s606_s21  ;;  %p44_p0 = scmp.ne.s32.totalorder %s551_s18, %s547_s17 }
  0x10   : > { %p35_p1 = scmp.eq.s32.totalorder %s34_s23, 0  ;;  %p45_p2 = scmp.eq.s32.totalorder %s555_s19, 0 }
  0x11   : > { %p50_p3 = scmp.ne.s32.totalorder %s547_s17, %s543_s16  ;;  %p51_p4 = scmp.eq.s32.totalorder %s602_s0, 0 }
  0x12   : > { %s618_s24 = scalar_select %p35_p1, %s551_s18, %s37_s22  }
  0x13   : > { %p620_p5 = por %p45_p2, %p44_p0  ;;  %p624_p6 = por %p51_p4, %p50_p3 }
  0x14   : > { %p100_p7 = scmp.eq.s32.totalorder %s602_s0, 1  ;;  %p106_p8 = scmp.eq.s32.totalorder %s337_s20, 1 }
  0x15   : > { %p376_p10 = scmp.lt.s32.totalorder %s555_s19, 2  ;;  %s640_s29 = sand.u32 1, %s551_s18  }
  0x16   : > { %p631_p11 = por %p100_p7, %p44_p0  ;;  %p635_p12 = por %p106_p8, %p50_p3 }
  0x17   : > { %s356_s30 = sshll.u32 %s555_s19, 4  ;;  %s340_s4 = sshll.u32 %s640_s29, 4 }
  0x18   : > { %s135_s7 = scalar_lea.hbm %s742_s1, %s356_s30  ;;  %s130_s9 = scalar_lea.vmem [#allocation4], %s340_s4 }
  0x19   : > { %s137_s8 = sshll.u32 %s135_s7, 4  ;;  %s139_s10 = sshll.u32 %s130_s9, 4  ;;  %s138_s8 = int_to_ptr.hbm [resolvable:$true] %s137_s8  ;;  %s140_s10 = int_to_ptr.vmem [resolvable:$true] %s139_s10 }
  0x1a   : > { %p649_p13 = pnand %p376_p10, %p620_p5  ;;  %p346_p0 = scmp.ge.s32.totalorder %s555_s19, 1 }
  0x1b   : > { %p164_p1 = scmp.lt.s32.totalorder %s555_s19, 3  ;;  %s127_s12 = scalar_lea.sflag [#allocation5], %s640_s29 }
  0x1c   : > { %s423_s13 = sshra.s32 %s138_s8, 4  ;;  %p427_p3 = pneg %p649_p13  ;;  %s424_s13 = int_to_ptr.hbm [resolvable:$true] %s423_s13 }
  0x1d   : > { %s425_s14 = scalar_lea.hbm %s424_s13, 16  ;;  %s430_s22 = scalar_lea.hbm %s742_s1, 32 }
  0x1e   : > { %p426_p2 = scmp.ne.s32.totalorder %s424_s13, %s425_s14  ;;  %p431_p5 = scmp.lt.s32.totalorder %s424_s13, %s742_s1 }
  0x1f   : > { %p432_p8 = scmp.lt.s32.totalorder %s430_s22, %s425_s14 }
  0x20   : > { %p428_p4 = pnand %p427_p3, %p426_p2 }
  0x21   : > { %p433_p10 = por %p432_p8, %p431_p5 }
  0x22   : > { %p429_p7 = pneg %p428_p4 }
  0x24   : > { %p434_p9 = pnand %p433_p10, %p429_p7 }
  0x26   : > { %437 = shalt.err (!%p434_p9)
}
  0x27   : > { %368 = dma.hbm_to_vmem [thread:$0]  (!%p649_p13), %s138_s8, 256, %s140_s10, %s127_s12  }
  0x28   : > { %p673_p2 = pnand %p346_p0, %p164_p1  ;;  %s155_s9 = scalar_lea.hbm %s743_s2, %s356_s30 }
  0x29   : > { %s157_s13 = sshll.u32 %s155_s9, 4  ;;  %s150_s14 = scalar_lea.vmem [#allocation7], %s340_s4  ;;  %s158_s13 = int_to_ptr.hbm [resolvable:$true] %s157_s13 }
  0x2a   : > { %s159_s15 = sshll.u32 %s150_s14, 4  ;;  %s147_s20 = scalar_lea.sflag [#allocation8], %s640_s29  ;;  %s160_s15 = int_to_ptr.vmem [resolvable:$true] %s159_s15 }
  0x2b   : > { %s453_s22 = sshra.s32 %s158_s13, 4  ;;  %s460_s12 = scalar_lea.hbm %s743_s2, 32  ;;  %s454_s22 = int_to_ptr.hbm [resolvable:$true] %s453_s22 }
  0x2c   : > { %s455_s23 = scalar_lea.hbm %s454_s22, 16  ;;  %p461_p4 = scmp.lt.s32.totalorder %s454_s22, %s743_s2 }
  0x2d   : > { %p456_p9 = scmp.ne.s32.totalorder %s454_s22, %s455_s23  ;;  %p462_p7 = scmp.lt.s32.totalorder %s460_s12, %s455_s23 }
  0x2f   : > { %p458_p0 = pnand %p456_p9, %p427_p3  ;;  %p463_p5 = por %p462_p7, %p461_p4 }
  0x31   : > { %p459_p1 = pneg %p458_p0 }
  0x33   : > { %p464_p8 = pnand %p463_p5, %p459_p1 }
  0x35   : > { %467 = shalt.err (!%p464_p8)
}
  0x36   : > { %371 = dma.hbm_to_vmem [thread:$0]  (!%p649_p13), %s158_s13, 256, %s160_s15, %s147_s20  }
  0x37   : > { %168 = sbr.rel (%p673_p2) target bundleno = 79 (0x4f), region = 28  ;;  %s695_s29 = sand.u32 (!%p673_p2), 1, %s547_s17  }
  0x38   : > { %s347_s4 = sshll.u32 (!%p673_p2), %s695_s29, 4  ;;  %s171_s6 = scalar_lea.sflag (!%p673_p2), [#allocation5], %s695_s29 }
  0x39   : > { %s174_s7 = scalar_lea.vmem (!%p673_p2), [#allocation4], %s347_s4 }
  0x3c   : > { %530 = dma.done.wait (%p624_p6), %s171_s6, 256  }
  0x3d   : > { %532 = vsyncadd (%p624_p6), %s171_s6, 4294967040  ;;  %s181_s11 = scalar_lea.sflag [#allocation8], %s695_s29  ;;  %s184_s9 = scalar_lea.vmem [#allocation7], %s347_s4 }
  0x3e   : > { %534 = dma.done.wait (%p624_p6), %s181_s11, 256  }
  0x3f   : > { %536 = vsyncadd (%p624_p6), %s181_s11, 4294967040  ;;  %s211_s5 = sld [smem:[#allocation3]]  ;;  %s358_s14 = sshll.u32 %s602_s0, 4  ;;  %v213_v0 = vld [vmem:[%s174_s7] sm:$0xff]  ;;  %v214_v3 = vld [vmem:[%s174_s7 + $0x8] sm:$0xff] }
  0x40   : > { %s350_s13 = sld [smem:[#allocation3 + $0x1]]  ;;  %s239_s22 = scalar_lea.hbm %s744_s3, %s358_s14  ;;  %v218_v1 = vld [vmem:[%s184_s9] sm:$0xff]  ;;  %v219_v6 = vld [vmem:[%s184_s9 + $0x8] sm:$0xff] }
  0x41   : > { %s210_s23 = scalar_lea.vmem [#allocation9], %s347_s4  ;;  %s243_s8 = sshll.u32 %s239_s22, 4  ;;  %s244_s8 = int_to_ptr.hbm [resolvable:$true] %s243_s8 }
  0x42   : > { %s241_s26 = sshll.u32 %s210_s23, 4  ;;  %s228_s0 = scalar_lea.sflag [#allocation6], %s695_s29  ;;  %s242_s26 = int_to_ptr.vmem [resolvable:$true] %s241_s26 }
  0x43   : > { %s497_s10 = sshra.s32 %s244_s8, 4  ;;  %s503_s4 = scalar_lea.hbm %s744_s3, 32  ;;  %s498_s10 = int_to_ptr.hbm [resolvable:$true] %s497_s10 }
  0x44   : > { %s499_s12 = scalar_lea.hbm %s498_s10, 16  ;;  %p504_p10 = scmp.lt.s32.totalorder %s498_s10, %s744_s3 }
  0x45   : > { %v220_v2 = vstv %s211_s5  ;;  %p500_p6 = scmp.ne.s32.totalorder %s498_s10, %s499_s12  ;;  %p505_p2 = scmp.lt.s32.totalorder %s503_s4, %s499_s12 }
  0x46   : > { %v215_v4 = vstv %s350_s13  ;;  %v221_v5 = vmul.f32 %v220_v2, %v218_v1  ;;  %v222_v9 = vmul.f32 %v220_v2, %v219_v6 }
  0x47   : > { %v216_v7 = vmul.f32 %v215_v4, %v213_v0  ;;  %v217_v8 = vmul.f32 %v215_v4, %v214_v3  ;;  %p501_p13 = pnand %p500_p6, %p631_p11  ;;  %p506_p9 = por %p505_p2, %p504_p10 }
  0x49   : > { %v223_v10 = vadd.f32 %v221_v5, %v216_v7  ;;  %v224_v11 = vadd.f32 %v222_v9, %v217_v8  ;;  %p502_p3 = pneg %p501_p13 }
  0x4b   : > { %225 = vst [vmem:[%s210_s23] sm:$0xff] %v223_v10  ;;  %p507_p0 = pnand %p506_p9, %p502_p3 }
  0x4c   : > { %226 = vst [vmem:[%s210_s23 + $0x8] sm:$0xff] %v224_v11 }
  0x4d   : > { %510 = shalt.err (!%p507_p0)
}
  0x4e   : > { %363 = dma.vmem_to_hbm [thread:$0]  (%p631_p11), %s242_s26, 256, %s244_s8, %s228_s0  }
  0x4f PF: > { %s255_s29 = sand.u32 1, %s543_s16   ;;  %p751_p1 = scmp.ge.s32.totalorder %s555_s19, 2 }
  0x50   : > { %s256_s11 = scalar_lea.sflag [#allocation6], %s255_s29 }
  0x51   : > { %p373_p4 = pnand %p751_p1, %p635_p12 }
  0x53   : > { %p374_p7 = pneg %p373_p4 }
  0x55   : > { %538 = dma.done.wait (%p374_p7), %s256_s11, 256  }
  0x56   : > { %540 = vsyncadd (%p374_p7), %s256_s11, 4294967040  ;;  %p27_p5 = scmp.ge.s32.totalorder %s606_s21, 4   ;;  %s752_s16 = smov %s547_s17 }
  0x57   : > { %s753_s17 = smov %s551_s18  ;;  %s754_s18 = smov %s618_s24 }
  0x58   : > { %s755_s19 = smov %s606_s21  ;;  %29 = sbr.rel (!%p27_p5) target bundleno = 13 (0xd), region = 86 }
  0x5d   :  { %262 = vsyncpa [#allocation5], 1 }
  0x5e   :  { %264 = vsyncpa [#allocation5 + $0x1], 1 }
  0x5f   :  { %265 = vsyncpa [#allocation8], 1 }
  0x60   :  { %267 = vsyncpa [#allocation8 + $0x1], 1 }
  0x61   :  { %268 = vsyncpa [#allocation6], 1 }
  0x62   :  { %270 = vsyncpa [#allocation6 + $0x1], 1 }

</bundles_post_ra>
